<compile_context>
chip_gen: v7x
topology: tpu7x:2x2x1
jax: 0.10.0
libtpu: 0.0.40
codegen_flags: <defaults>
</compile_context>

<pallas_src>
import jax
import jax.numpy as jnp
from jax.experimental import pallas as pl
from jax.experimental.pallas import tpu as pltpu


def mlp_kernel(x_ref, w1_ref, b1_ref, w2_ref, b2_ref, o_ref):
    # First linear + ReLU: MXU matmul with f32 accumulation.
    h = jnp.dot(x_ref[...], w1_ref[...], preferred_element_type=jnp.float32)
    h = jnp.maximum(h + b1_ref[...], 0.0)                 # (TM, H) + (1, H) broadcast

    # Second linear has output width 1: an N=1 matmul would occupy the MXU
    # (N padded to 128/256 lanes) for ~1% utilization, so do it as a
    # VPU elementwise multiply + XLU row reduction instead.
    z = jnp.sum(h * w2_ref[...], axis=-1, keepdims=True)  # (TM, 1)
    z = z + b2_ref[0, 0]                                  # scalar bias from SMEM

    o_ref[...] = jax.nn.sigmoid(z).astype(o_ref.dtype)


def neural_net_forward(x, w1, b1, w2, b2, *, block_b=128):
    B, Din = x.shape
    H = w1.shape[1]
    tm = min(block_b, B)
    grid = (pl.cdiv(B, tm),)
    # TODO(synk): for v6e/v7x, casting x/w1 to bf16 (keeping f32 accumulation) would halve
    # HBM traffic and roughly double MXU throughput; kept f32 here for tight tolerance & v5e.
    return pl.pallas_call(
        mlp_kernel,
        out_shape=jax.ShapeDtypeStruct((B, 1), jnp.float32),
        grid=grid,
        in_specs=[
            pl.BlockSpec((tm, Din), lambda i: (i, 0)),            # batch-tiled activations
            pl.BlockSpec((Din, H), lambda i: (0, 0)),             # resident W1
            pl.BlockSpec((1, H), lambda i: (0, 0)),               # resident b1
            pl.BlockSpec((1, H), lambda i: (0, 0)),               # resident w2 row
            pl.BlockSpec(memory_space=pltpu.MemorySpace.SMEM),    # scalar b2 in SMEM
        ],
        out_specs=pl.BlockSpec((tm, 1), lambda i: (i, 0)),
        compiler_params=pltpu.CompilerParams(
            dimension_semantics=("parallel",),        # megacore sharding on v7x, harmless elsewhere
            vmem_limit_bytes=32 * 1024 * 1024,        # safe under v7x's 64 MiB physical VMEM
        ),
    )(x, w1, b1, w2, b2)


def init_params(key, input_size, hidden_size):
    # Deterministic init mimicking PyTorch nn.Linear default: U(-1/sqrt(fan_in), +1/sqrt(fan_in))
    k1, k2, k3, k4 = jax.random.split(key, 4)
    s1 = 1.0 / jnp.sqrt(input_size)
    s2 = 1.0 / jnp.sqrt(hidden_size)
    w1 = jax.random.uniform(k1, (input_size, hidden_size), jnp.float32, -s1, s1)
    b1 = jax.random.uniform(k2, (1, hidden_size), jnp.float32, -s1, s1)
    w2 = jax.random.uniform(k3, (1, hidden_size), jnp.float32, -s2, s2)
    b2 = jax.random.uniform(k4, (1, 1), jnp.float32, -s2, s2)
    return w1, b1, w2, b2


if __name__ == "__main__":
    batch = 256          # divisible by the 128-row batch tile -> grid of 2 steps
    input_size = 32
    hidden_size = 32

    key = jax.random.PRNGKey(0)
    kx, kp = jax.random.split(key)
    x = jax.random.normal(kx, (batch, input_size), jnp.float32)
    w1, b1, w2, b2 = init_params(kp, input_size, hidden_size)

    out = neural_net_forward(x, w1, b1, w2, b2)
    out = jax.block_until_ready(out)

    # Reference check in plain JAX (matmul form, independent of kernel's reduce trick)
    ref = jax.nn.sigmoid(jnp.maximum(x @ w1 + b1, 0.0) @ w2.T + b2)
    assert out.shape == (batch, 1)
    assert jnp.allclose(out, ref, atol=1e-5, rtol=1e-5)

    print("KERNEL_OK")
</pallas_src>

<mosaic_0001>
module attributes {stable_mosaic.version = 11 : i64} {
  func.func @mlp_kernel(%arg0: i32, %arg1: memref<128x32xf32, #tpu.memory_space<vmem>>, %arg2: memref<32x32xf32, #tpu.memory_space<vmem>>, %arg3: memref<1x32xf32, #tpu.memory_space<vmem>>, %arg4: memref<1x32xf32, #tpu.memory_space<vmem>>, %arg5: memref<1x1xf32, #tpu.memory_space<smem>>, %arg6: memref<128x1xf32, #tpu.memory_space<vmem>>) attributes {dimension_semantics = [#tpu.dimension_semantics<parallel>], iteration_bounds = array<i64: 2>, scalar_prefetch = 0 : i64, scratch_operands = 0 : i64, tpu.core_type = #tpu.core_type<tc>, window_params = [{transform_indices = @transform_0, window_bounds = array<i64: 128, 32>}, {pipeline_mode = #tpu.pipeline_mode<synchronous>, transform_indices = @transform_1, window_bounds = array<i64: 32, 32>}, {pipeline_mode = #tpu.pipeline_mode<synchronous>, transform_indices = @transform_2, window_bounds = array<i64: 1, 32>}, {pipeline_mode = #tpu.pipeline_mode<synchronous>, transform_indices = @transform_3, window_bounds = array<i64: 1, 32>}, {transform_indices = @transform_4, window_bounds = array<i64: 1, 1>}, {transform_indices = @transform_5, window_bounds = array<i64: 128, 1>}]} {
    %c0 = arith.constant 0 : index
    %c0_0 = arith.constant 0 : index
    %0 = vector.load %arg1[%c0, %c0_0] : memref<128x32xf32, #tpu.memory_space<vmem>>, vector<128x32xf32>
    %c0_1 = arith.constant 0 : index
    %c0_2 = arith.constant 0 : index
    %1 = vector.load %arg2[%c0_1, %c0_2] : memref<32x32xf32, #tpu.memory_space<vmem>>, vector<32x32xf32>
    %cst = arith.constant dense<0.000000e+00> : vector<128x32xf32>
    %2 = tpu.matmul %0, %1, %cst {dimension_numbers = #tpu.dot_dimension_numbers<[1], [0], [0], [1], [0, 0, 1, 1], [], []>} : vector<128x32xf32>, vector<32x32xf32>, vector<128x32xf32> -> vector<128x32xf32>
    %c0_3 = arith.constant 0 : index
    %c0_4 = arith.constant 0 : index
    %3 = vector.load %arg3[%c0_3, %c0_4] : memref<1x32xf32, #tpu.memory_space<vmem>>, vector<1x32xf32>
    %4 = vector.broadcast %3 : vector<1x32xf32> to vector<128x32xf32>
    %5 = arith.addf %2, %4 : vector<128x32xf32>
    %cst_5 = arith.constant 0.000000e+00 : f32
    %6 = vector.broadcast %cst_5 : f32 to vector<128x32xf32>
    %7 = arith.maximumf %5, %6 : vector<128x32xf32>
    %c0_6 = arith.constant 0 : index
    %c0_7 = arith.constant 0 : index
    %8 = vector.load %arg4[%c0_6, %c0_7] : memref<1x32xf32, #tpu.memory_space<vmem>>, vector<1x32xf32>
    %9 = vector.broadcast %8 : vector<1x32xf32> to vector<128x32xf32>
    %10 = arith.mulf %7, %9 : vector<128x32xf32>
    %cst_8 = arith.constant dense<0.000000e+00> : vector<128xf32>
    %11 = vector.multi_reduction <add>, %10, %cst_8 [1] : vector<128x32xf32> to vector<128xf32>
    %12 = vector.shape_cast %11 : vector<128xf32> to vector<128x1xf32>
    %c0_9 = arith.constant 0 : index
    %c0_10 = arith.constant 0 : index
    %13 = memref.load %arg5[%c0_9, %c0_10] : memref<1x1xf32, #tpu.memory_space<smem>>
    %14 = vector.broadcast %13 : f32 to vector<128x1xf32>
    %15 = arith.addf %12, %14 : vector<128x1xf32>
    %16 = arith.negf %15 : vector<128x1xf32>
    %17 = math.exp %16 : vector<128x1xf32>
    %cst_11 = arith.constant 1.000000e+00 : f32
    %18 = vector.broadcast %cst_11 : f32 to vector<128x1xf32>
    %19 = arith.addf %18, %17 : vector<128x1xf32>
    %20 = arith.divf %18, %19 : vector<128x1xf32>
    %c0_12 = arith.constant 0 : index
    %c0_13 = arith.constant 0 : index
    %21 = vector.load %arg6[%c0_12, %c0_13] : memref<128x1xf32, #tpu.memory_space<vmem>>, vector<128x1xf32>
    tpu.vector_store %arg6[%c0_12, %c0_13], %20 {strides = array<i32>} : memref<128x1xf32, #tpu.memory_space<vmem>>, vector<128x1xf32>,
    return
  }
  func.func @transform_0(%arg0: i32) -> (i32, i32) {
    %c0_i32 = arith.constant 0 : i32
    %c0_i32_0 = arith.constant 0 : i32
    return %arg0, %c0_i32 : i32, i32
  }
  func.func @transform_1(%arg0: i32) -> (i32, i32) {
    %c0_i32 = arith.constant 0 : i32
    %c0_i32_0 = arith.constant 0 : i32
    %c0_i32_1 = arith.constant 0 : i32
    return %c0_i32, %c0_i32_0 : i32, i32
  }
  func.func @transform_2(%arg0: i32) -> (i32, i32) {
    %c0_i32 = arith.constant 0 : i32
    %c0_i32_0 = arith.constant 0 : i32
    %c0_i32_1 = arith.constant 0 : i32
    return %c0_i32, %c0_i32_0 : i32, i32
  }
  func.func @transform_3(%arg0: i32) -> (i32, i32) {
    %c0_i32 = arith.constant 0 : i32
    %c0_i32_0 = arith.constant 0 : i32
    %c0_i32_1 = arith.constant 0 : i32
    return %c0_i32, %c0_i32_0 : i32, i32
  }
  func.func @transform_4(%arg0: i32) -> (i32, i32) {
    %c0_i32 = arith.constant 0 : i32
    %c0_i32_0 = arith.constant 0 : i32
    %c0_i32_1 = arith.constant 0 : i32
    return %c0_i32, %c0_i32_0 : i32, i32
  }
  func.func @transform_5(%arg0: i32) -> (i32, i32) {
    %c0_i32 = arith.constant 0 : i32
    %c0_i32_0 = arith.constant 0 : i32
    return %arg0, %c0_i32 : i32, i32
  }
}

</mosaic_0001>

<bundles_post_ra>
// kernel: tpu_custom_call.1
= control target key start
LH: loop header
LB: loop body
LE: loop exit
PB: predicated region body
PF: predicated region fallthrough
CT: control target
= control target key end

     0   :  { %s946_s20 = smov 0   ;;  %s1126_s0 = inlined_call_operand.vmem [shape: f32[256,32], index: 0, kind: input, shape index: {}]   ;;  %s1127_s1 = inlined_call_operand.vmem [shape: f32[32,32], index: 1, kind: input, shape index: {}]   ;;  %s1128_s2 = inlined_call_operand.vmem [shape: f32[1,32], index: 2, kind: input, shape index: {}]   ;;  %s1129_s3 = inlined_call_operand.vmem [shape: f32[1,32], index: 3, kind: input, shape index: {}]   ;;  %s1130_s4 = inlined_call_operand.<no memory space> [shape: f32[1,1], index: 4, kind: input, shape index: {}]   ;;  %s1131_s5 = inlined_call_operand.vmem [shape: f32[256,1], index: 5, kind: output, shape index: {}]  }
   0x1   :  { %10 = sst [smem:[#allocation2]] %s1130_s4 }
   0x2 LB: > { %s724_s21 = sadd.s32 4294967295, %s911_s20   ;;  %p728_p0 = scmp.ge.s32.totalorder %s911_s20, 1  ;;  %s911_s20 = sphi %s946_s20, %s16_s20  }
   0x3   : > { %p189_p1 = scmp.lt.s32.totalorder %s911_s20, 3 }
   0x5   : > { %p190_p2 = pnand %p728_p0, %p189_p1 }
   0x6   : > { %v245_v0 = vld [vmem:[%s1127_s1] sm:$0xff] (!%p190_p2)  ;;  %v246_v1 = vld [vmem:[%s1127_s1 + $0x8] sm:$0xff] (!%p190_p2)  ;;  %v247_v2 = vld [vmem:[%s1127_s1 + $0x10] sm:$0xff] (!%p190_p2)  ;;  %s729_s27 = sshll.u32 (!%p190_p2), %s724_s21, 4  ;;  %vm256_vm0 = vcmask (!%p190_p2), 261120   ;;  %s537_s13 = sld [smem:[#allocation2]] (!%p190_p2) }
   0x7   : > { %193 = sbr.rel (%p190_p2) target bundleno = 441 (0x1b9), region = 40  ;;  %v821_v3 = vpack.c.bf16 (!%p190_p2), %v246_v1, %v245_v0  ;;  %v248_v4 = vld [vmem:[%s1127_s1 + $0x18] sm:$0xff] (!%p190_p2)  ;;  %p218_p3 = scmp.lt.s32.totalorder (!%p190_p2), %s729_s27, 31  ;;  %v1011_v22 = vld [vmem:[%s1128_s2] ss:$0 sm:$0xff] (!%p190_p2)  ;;  %vm651_vm1 = vcmask (!%p190_p2), 7168  }
   0x8   : > { %v825_v5 = vpack.c.bf16 (!%p190_p2), %v248_v4, %v247_v2  ;;  %v1020_v31 = vld [vmem:[%s1129_s3] ss:$0 sm:$0xff] (!%p190_p2) }
   0x9   : > { %822 = vmatprep.subr.bf16.mxu0 (!%p190_p2), %v821_v3  ;;  %829 = vmatprep.subr.bf16.mxu1 (!%p190_p2), %v821_v3 }
   0xa   : > { %824 = vmatpush3.bf16.msra.mxu0 (!%p190_p2), %v821_v3  ;;  %831 = vmatpush3.bf16.msra.mxu1 (!%p190_p2), %v821_v3 }
   0xb   : > { %826 = vmatprep.subr.bf16.mxu0 (!%p190_p2), %v825_v5  ;;  %830 = vmatprep.subr.bf16.mxu1 (!%p190_p2), %v825_v5 }
   0xe   : > { %s1133_s27 = smov (!%p218_p3, %s729_s27), 31  ;;  %828 = vmatpush3.bf16.msra.mxu0 %v825_v5  ;;  %832 = vmatpush3.bf16.msra.mxu1 %v825_v5 }
   0xf   : > { %s730_s30 = sshll.u32 %s1133_s27, 3 }
  0x10   : > { %s974_s8 = scalar_lea.vmem %s1126_s0, %s730_s30  ;;  %s1087_s16 = scalar_lea.vmem %s1131_s5, %s730_s30 }
  0x11   : > { %v229_v6 = vld [vmem:[%s974_s8] sm:$0xff]  ;;  %v230_v8 = vld [vmem:[%s974_s8 + $0x8] sm:$0xff]  ;;  %v231_v10 = vld [vmem:[%s974_s8 + $0x10] sm:$0xff] }
  0x12   : > { %v237_v7 = vld [vmem:[%s974_s8 + $0x40] sm:$0xff]  ;;  %v238_v9 = vld [vmem:[%s974_s8 + $0x48] sm:$0xff]  ;;  %797 = vmatprep.mubr.msk.f32.mxu0 %vm256_vm0, %v229_v6  ;;  %v239_v11 = vld [vmem:[%s974_s8 + $0x50] sm:$0xff] }
  0x13   : > { %809 = vmatprep.mubr.msk.f32.mxu1 %vm256_vm0, %v237_v7  ;;  %798 = vmatmul.mubr.msk.f32.vlgmr.msra.gmra.mrb[0].mxu0 %vm256_vm0, %v230_v8  ;;  %v232_v12 = vld [vmem:[%s974_s8 + $0x18] sm:$0xff]  ;;  %v233_v14 = vld [vmem:[%s974_s8 + $0x20] sm:$0xff]  ;;  %v234_v16 = vld [vmem:[%s974_s8 + $0x28] sm:$0xff] }
  0x14   : > { %810 = vmatmul.mubr.msk.f32.vlgmr.msra.gmra.mrb[0].mxu1 %vm256_vm0, %v238_v9  ;;  %800 = vmatprep.mubr.msk.f32.mxu0 %vm256_vm0, %v231_v10  ;;  %v240_v13 = vld [vmem:[%s974_s8 + $0x58] sm:$0xff]  ;;  %v241_v15 = vld [vmem:[%s974_s8 + $0x60] sm:$0xff]  ;;  %v242_v17 = vld [vmem:[%s974_s8 + $0x68] sm:$0xff] }
  0x15   : > { %812 = vmatprep.mubr.msk.f32.mxu1 %vm256_vm0, %v239_v11  ;;  %v235_v18 = vld [vmem:[%s974_s8 + $0x30] sm:$0xff]  ;;  %v236_v20 = vld [vmem:[%s974_s8 + $0x38] sm:$0xff] }
  0x16   : > { %v243_v19 = vld [vmem:[%s974_s8 + $0x70] sm:$0xff]  ;;  %v244_v21 = vld [vmem:[%s974_s8 + $0x78] sm:$0xff] }
  0x17   : > { %801 = vmatmul.mubr.msk.f32.gmra.mrb[2].mxu0 %vm256_vm0, %v232_v12 }
  0x18   : > { %813 = vmatmul.mubr.msk.f32.gmra.mrb[2].mxu1 %vm256_vm0, %v240_v13  ;;  %803 = vmatprep.mubr.msk.f32.mxu0 %vm256_vm0, %v233_v14 }
  0x19   : > { %815 = vmatprep.mubr.msk.f32.mxu1 %vm256_vm0, %v241_v15 }
  0x1b   : > { %804 = vmatmul.mubr.msk.f32.gmra.mrb[4].mxu0 %vm256_vm0, %v234_v16 }
  0x1c   : > { %816 = vmatmul.mubr.msk.f32.gmra.mrb[4].mxu1 %vm256_vm0, %v242_v17  ;;  %806 = vmatprep.mubr.msk.f32.mxu0 %vm256_vm0, %v235_v18 }
  0x1d   : > { %818 = vmatprep.mubr.msk.f32.mxu1 %vm256_vm0, %v243_v19 }
  0x1f   : > { %807 = vmatmul.mubr.msk.f32.gmra.mrb[6].mxu0 %vm256_vm0, %v236_v20 }
  0x20   : > { %819 = vmatmul.mubr.msk.f32.gmra.mrb[6].mxu1 %vm256_vm0, %v244_v21 }
  0xe6   : > { %v799_v23 = vpop.f32.mrb[0].mxu0 }
  0xe7   : > { %v811_v24 = vpop.f32.mrb[0].mxu1  ;;  %v377_v25 = vadd.f32 %v799_v23, %v1011_v22  ;;  %v371_v27 = vpop.f32.mrb[1].mxu0 }
  0xe8   : > { %v417_v26 = vadd.f32 %v811_v24, %v1011_v22  ;;  %v411_v28 = vpop.f32.mrb[1].mxu1  ;;  %v372_v29 = vadd.f32 %v1011_v22, %v371_v27 }
  0xe9   : > { %v412_v30 = vadd.f32 %v1011_v22, %v411_v28  ;;  %v451_v32 = vmax.f32 %v377_v25, 0.0 }
  0xea   : > { %v459_v33 = vmax.f32 %v417_v26, 0.0  ;;  %v450_v34 = vmax.f32 %v372_v29, 0.0  ;;  %v802_v35 = vpop.f32.mrb[2].mxu0 }
  0xeb   : > { %v814_v36 = vpop.f32.mrb[2].mxu1  ;;  %v387_v37 = vadd.f32 %v802_v35, %v1011_v22  ;;  %v381_v38 = vpop.f32.mrb[3].mxu0  ;;  %v474_v42 = vmul.f32 %v1020_v31, %v451_v32  ;;  %v458_v43 = vmax.f32 %v412_v30, 0.0 }
  0xec   : > { %v427_v39 = vadd.f32 %v814_v36, %v1011_v22  ;;  %v482_v40 = vmul.f32 %v1020_v31, %v459_v33  ;;  %v421_v41 = vpop.f32.mrb[3].mxu1  ;;  %v382_v44 = vadd.f32 %v1011_v22, %v381_v38  ;;  %v473_v46 = vmul.f32 %v1020_v31, %v450_v34 }
  0xed   : > { %v422_v45 = vadd.f32 %v1011_v22, %v421_v41  ;;  %v453_v47 = vmax.f32 %v387_v37, 0.0  ;;  %v492_v50 = vsel %vm256_vm0, %v474_v42, 0.0  ;;  %v481_v59 = vmul.f32 %v1020_v31, %v458_v43 }
  0xee   : > { %v461_v48 = vmax.f32 %v427_v39, 0.0  ;;  %v516_v49 = vsel %vm256_vm0, %v482_v40, 0.0  ;;  %493 = vadd.xlane.f32.xlu0 %v492_v50  ;;  %v805_v51 = vpop.f32.mrb[4].mxu0  ;;  %v452_v60 = vmax.f32 %v382_v44, 0.0  ;;  %v489_v63 = vsel %vm256_vm0, %v473_v46, 0.0 }
  0xef   : > { %517 = vadd.xlane.f32.xlu1 %v516_v49  ;;  %v817_v52 = vpop.f32.mrb[4].mxu1  ;;  %v476_v53 = vmul.f32 %v1020_v31, %v453_v47  ;;  %v397_v54 = vadd.f32 %v805_v51, %v1011_v22  ;;  %v391_v55 = vpop.f32.mrb[5].mxu0  ;;  %v460_v61 = vmax.f32 %v422_v45, 0.0  ;;  %v513_v9 = vsel %vm256_vm0, %v481_v59, 0.0 }
  0xf0   : > { %v484_v56 = vmul.f32 %v1020_v31, %v461_v48  ;;  %v431_v57 = vpop.f32.mrb[5].mxu1  ;;  %v392_v58 = vadd.f32 %v1011_v22, %v391_v55  ;;  %v437_v0 = vadd.f32 %v817_v52, %v1011_v22  ;;  %v475_v10 = vmul.f32 %v1020_v31, %v452_v60 }
  0xf1   : > { %v498_v62 = vsel %vm256_vm0, %v476_v53, 0.0  ;;  %v432_v1 = vadd.f32 %v1011_v22, %v431_v57  ;;  %v455_v4 = vmax.f32 %v397_v54, 0.0  ;;  %v483_v11 = vmul.f32 %v1020_v31, %v460_v61 }
  0xf2   : > { %490 = vadd.xlane.f32.xlu0 %v489_v63  ;;  %v808_v2 = vpop.f32.mrb[6].mxu0  ;;  %v454_v5 = vmax.f32 %v392_v58, 0.0  ;;  %v522_v6 = vsel %vm256_vm0, %v484_v56, 0.0  ;;  %v463_v12 = vmax.f32 %v437_v0, 0.0  ;;  %v495_v18 = vsel %vm256_vm0, %v475_v10, 0.0 }
  0xf3   : > { %499 = vadd.xlane.f32.xlu1 %v498_v62  ;;  %v820_v3 = vpop.f32.mrb[6].mxu1  ;;  %v401_v7 = vpop.f32.mrb[7].mxu0  ;;  %v462_v13 = vmax.f32 %v432_v1, 0.0  ;;  %v407_v14 = vadd.f32 %v808_v2, %v1011_v22  ;;  %v478_v16 = vmul.f32 %v1020_v31, %v455_v4  ;;  %v519_v19 = vsel %vm256_vm0, %v483_v11, 0.0 }
  0xf4   : > { %v441_v8 = vpop.f32.mrb[7].mxu1  ;;  %v402_v15 = vadd.f32 %v1011_v22, %v401_v7  ;;  %v477_v17 = vmul.f32 %v1020_v31, %v454_v5  ;;  %v447_v20 = vadd.f32 %v820_v3, %v1011_v22  ;;  %v486_v23 = vmul.f32 %v1020_v31, %v463_v12 }
  0xf5   : > { %v442_v21 = vadd.f32 %v1011_v22, %v441_v8  ;;  %v485_v24 = vmul.f32 %v1020_v31, %v462_v13  ;;  %v457_v25 = vmax.f32 %v407_v14, 0.0  ;;  %v504_v27 = vsel %vm256_vm0, %v478_v16, 0.0 }
  0xf6   : > { %514 = vadd.xlane.f32.xlu0 %v513_v9  ;;  %v456_v26 = vmax.f32 %v402_v15, 0.0  ;;  %v501_v28 = vsel %vm256_vm0, %v477_v17, 0.0  ;;  %v465_v29 = vmax.f32 %v447_v20, 0.0  ;;  %v528_v30 = vsel %vm256_vm0, %v486_v23, 0.0 }
  0xf7   : > { %523 = vadd.xlane.f32.xlu1 %v522_v6  ;;  %v464_v32 = vmax.f32 %v442_v21, 0.0  ;;  %v525_v33 = vsel %vm256_vm0, %v485_v24, 0.0  ;;  %v480_v22 = vmul.f32 %v1020_v31, %v457_v25  ;;  %v1066_v41 = vstv %s537_s13 }
  0xf8   : > { %v479_v34 = vmul.f32 %v1020_v31, %v456_v26  ;;  %v488_v37 = vmul.f32 %v1020_v31, %v465_v29 }
  0xf9   : > { %v510_v35 = vsel %vm256_vm0, %v480_v22, 0.0  ;;  %v487_v38 = vmul.f32 %v1020_v31, %v464_v32 }
  0xfa   : > { %520 = vadd.xlane.f32.xlu0 %v519_v19  ;;  %v507_v36 = vsel %vm256_vm0, %v479_v34, 0.0  ;;  %v534_v39 = vsel %vm256_vm0, %v488_v37, 0.0 }
  0xfb   : > { %496 = vadd.xlane.f32.xlu1 %v495_v18  ;;  %v531_v40 = vsel %vm256_vm0, %v487_v38, 0.0 }
  0xfe   : > { %502 = vadd.xlane.f32.xlu0 %v501_v28 }
  0xff   : > { %505 = vadd.xlane.f32.xlu1 %v504_v27 }
 0x102   : > { %526 = vadd.xlane.f32.xlu0 %v525_v33 }
 0x103   : > { %529 = vadd.xlane.f32.xlu1 %v528_v30 }
 0x106   : > { %508 = vadd.xlane.f32.xlu0 %v507_v36 }
 0x107   : > { %511 = vadd.xlane.f32.xlu1 %v510_v35 }
 0x10a   : > { %532 = vadd.xlane.f32.xlu0 %v531_v40 }
 0x10b   : > { %535 = vadd.xlane.f32.xlu1 %v534_v39 }
 0x17b   : > { %v494_v43 = vpop.xlane.xlu0 %493 }
 0x17c   : > { %v518_v42 = vpop.xlane.xlu1 %517  ;;  %v540_v45 = vadd.f32 %v1066_v41, %v494_v43 }
 0x17d   : > { %v548_v44 = vadd.f32 %v1066_v41, %v518_v42 }
 0x17e   : > { %v752_v47 = vmul.f32 -1.442695, %v540_v45 }
 0x17f   : > { %v760_v46 = vmul.f32 -1.442695, %v548_v44  ;;  %v491_v48 = vpop.xlane.xlu0 %490 }
 0x180   : > { %v500_v31 = vpop.xlane.xlu1 %499  ;;  %v539_v50 = vadd.f32 %v1066_v41, %v491_v48 }
 0x181   : > { %841 = vpow2.f32 %v760_v46  ;;  %v542_v49 = vadd.f32 %v1066_v41, %v500_v31 }
 0x182   : > { %843 = vpow2.f32 %v752_v47  ;;  %v751_v52 = vmul.f32 -1.442695, %v539_v50 }
 0x183   : > { %v754_v51 = vmul.f32 -1.442695, %v542_v49  ;;  %v515_v54 = vpop.xlane.xlu0 %514 }
 0x184   : > { %v524_v53 = vpop.xlane.xlu1 %523  ;;  %v547_v56 = vadd.f32 %v1066_v41, %v515_v54 }
 0x185   : > { %845 = vpow2.f32 %v754_v51  ;;  %v550_v55 = vadd.f32 %v1066_v41, %v524_v53 }
 0x186   : > { %847 = vpow2.f32 %v751_v52  ;;  %v759_v58 = vmul.f32 -1.442695, %v547_v56 }
 0x187   : > { %v762_v57 = vmul.f32 -1.442695, %v550_v55  ;;  %v521_v60 = vpop.xlane.xlu0 %520 }
 0x188   : > { %v497_v59 = vpop.xlane.xlu1 %496  ;;  %v549_v62 = vadd.f32 %v1066_v41, %v521_v60 }
 0x189   : > { %849 = vpow2.f32 %v762_v57  ;;  %v541_v61 = vadd.f32 %v1066_v41, %v497_v59 }
 0x18a   : > { %851 = vpow2.f32 %v759_v58  ;;  %v761_v3 = vmul.f32 -1.442695, %v549_v62 }
 0x18b   : > { %v842_v63 = vpop.eup %841  ;;  %v753_v0 = vmul.f32 -1.442695, %v541_v61  ;;  %v503_v5 = vpop.xlane.xlu0 %502 }
 0x18c   : > { %v844_v1 = vpop.eup %843  ;;  %v612_v2 = vadd.f32 1.0, %v842_v63  ;;  %v506_v4 = vpop.xlane.xlu1 %505  ;;  %v543_v8 = vadd.f32 %v1066_v41, %v503_v5 }
 0x18d   : > { %v604_v6 = vadd.f32 1.0, %v844_v1  ;;  %853 = vpow2.f32 %v753_v0  ;;  %v544_v7 = vadd.f32 %v1066_v41, %v506_v4 }
 0x18e   : > { %855 = vrcp.f32 %v612_v2  ;;  %v755_v13 = vmul.f32 -1.442695, %v543_v8 }
 0x18f   : > { %v846_v9 = vpop.eup %845  ;;  %857 = vrcp.f32 %v604_v6  ;;  %v756_v10 = vmul.f32 -1.442695, %v544_v7  ;;  %v527_v15 = vpop.xlane.xlu0 %526 }
 0x190   : > { %v848_v11 = vpop.eup %847  ;;  %v606_v12 = vadd.f32 1.0, %v846_v9  ;;  %859 = vpow2.f32 %v761_v3  ;;  %v530_v14 = vpop.xlane.xlu1 %529  ;;  %v551_v18 = vadd.f32 %v1066_v41, %v527_v15 }
 0x191   : > { %v603_v16 = vadd.f32 1.0, %v848_v11  ;;  %861 = vpow2.f32 %v756_v10  ;;  %v552_v17 = vadd.f32 %v1066_v41, %v530_v14 }
 0x192   : > { %863 = vrcp.f32 %v606_v12  ;;  %v763_v24 = vmul.f32 -1.442695, %v551_v18 }
 0x193   : > { %v850_v19 = vpop.eup %849  ;;  %865 = vrcp.f32 %v603_v16  ;;  %v764_v20 = vmul.f32 -1.442695, %v552_v17  ;;  %v509_v26 = vpop.xlane.xlu0 %508 }
 0x194   : > { %v852_v21 = vpop.eup %851  ;;  %v614_v23 = vadd.f32 1.0, %v850_v19  ;;  %867 = vpow2.f32 %v755_v13  ;;  %v512_v25 = vpop.xlane.xlu1 %511  ;;  %v545_v29 = vadd.f32 %v1066_v41, %v509_v26 }
 0x195   : > { %v611_v27 = vadd.f32 1.0, %v852_v21  ;;  %869 = vpow2.f32 %v764_v20  ;;  %v546_v28 = vadd.f32 %v1066_v41, %v512_v25 }
 0x196   : > { %871 = vrcp.f32 %v614_v23  ;;  %v757_v33 = vmul.f32 -1.442695, %v545_v29 }
 0x197   : > { %v854_v30 = vpop.eup %853  ;;  %873 = vrcp.f32 %v611_v27  ;;  %v758_v32 = vmul.f32 -1.442695, %v546_v28  ;;  %v533_v36 = vpop.xlane.xlu0 %532 }
 0x198   : > { %v856_v22 = vpop.eup %855  ;;  %v605_v34 = vadd.f32 1.0, %v854_v30  ;;  %875 = vpow2.f32 %v763_v24  ;;  %v536_v35 = vpop.xlane.xlu1 %535  ;;  %v553_v39 = vadd.f32 %v1066_v41, %v533_v36 }
 0x199   : > { %v858_v37 = vpop.eup %857  ;;  %661 = vst.msk [vmem:[%s1087_s16 + $0x48] sm:$0xff] %vm651_vm1, %v856_v22  ;;  %877 = vpow2.f32 %v758_v32  ;;  %v554_v38 = vadd.f32 %v1066_v41, %v536_v35 }
 0x19a   : > { %v860_v40 = vpop.eup %859  ;;  %653 = vst.msk [vmem:[%s1087_s16 + $0x8] sm:$0xff] %vm651_vm1, %v858_v37  ;;  %879 = vrcp.f32 %v605_v34  ;;  %v765_v47 = vmul.f32 -1.442695, %v553_v39 }
 0x19b   : > { %v862_v42 = vpop.eup %861  ;;  %v613_v43 = vadd.f32 1.0, %v860_v40  ;;  %881 = vpow2.f32 %v757_v33  ;;  %v766_v44 = vmul.f32 -1.442695, %v554_v38 }
 0x19c   : > { %v864_v45 = vpop.eup %863  ;;  %v608_v46 = vadd.f32 1.0, %v862_v42 }
 0x19d   : > { %v866_v31 = vpop.eup %865  ;;  %655 = vst.msk [vmem:[%s1087_s16 + $0x18] sm:$0xff] %vm651_vm1, %v864_v45  ;;  %883 = vrcp.f32 %v613_v43 }
 0x19e   : > { %v868_v48 = vpop.eup %867  ;;  %652 = vst.msk [vmem:[%s1087_s16] sm:$0xff] %vm651_vm1, %v866_v31  ;;  %885 = vrcp.f32 %v608_v46 }
 0x19f   : > { %v870_v41 = vpop.eup %869  ;;  %v607_v49 = vadd.f32 1.0, %v868_v48  ;;  %887 = vpow2.f32 %v766_v44 }
 0x1a0   : > { %v872_v50 = vpop.eup %871  ;;  %v616_v51 = vadd.f32 1.0, %v870_v41  ;;  %889 = vpow2.f32 %v765_v47 }
 0x1a1   : > { %v874_v52 = vpop.eup %873  ;;  %663 = vst.msk [vmem:[%s1087_s16 + $0x58] sm:$0xff] %vm651_vm1, %v872_v50  ;;  %891 = vrcp.f32 %v607_v49 }
 0x1a2   : > { %v876_v53 = vpop.eup %875  ;;  %660 = vst.msk [vmem:[%s1087_s16 + $0x40] sm:$0xff] %vm651_vm1, %v874_v52  ;;  %893 = vrcp.f32 %v616_v51 }
 0x1a3   : > { %v878_v54 = vpop.eup %877  ;;  %v615_v55 = vadd.f32 1.0, %v876_v53 }
 0x1a4   : > { %v880_v56 = vpop.eup %879  ;;  %v610_v57 = vadd.f32 1.0, %v878_v54 }
 0x1a5   : > { %v882_v58 = vpop.eup %881  ;;  %654 = vst.msk [vmem:[%s1087_s16 + $0x10] sm:$0xff] %vm651_vm1, %v880_v56  ;;  %895 = vrcp.f32 %v615_v55 }
 0x1a6   : > { %897 = vrcp.f32 %v610_v57  ;;  %v609_v59 = vadd.f32 1.0, %v882_v58 }
 0x1a7   : > { %v884_v60 = vpop.eup %883 }
 0x1a8   : > { %v886_v61 = vpop.eup %885  ;;  %662 = vst.msk [vmem:[%s1087_s16 + $0x50] sm:$0xff] %vm651_vm1, %v884_v60  ;;  %899 = vrcp.f32 %v609_v59 }
 0x1a9   : > { %v888_v62 = vpop.eup %887  ;;  %657 = vst.msk [vmem:[%s1087_s16 + $0x28] sm:$0xff] %vm651_vm1, %v886_v61 }
 0x1aa   : > { %v890_v63 = vpop.eup %889  ;;  %v618_v0 = vadd.f32 1.0, %v888_v62 }
 0x1ab   : > { %v892_v1 = vpop.eup %891  ;;  %v617_v2 = vadd.f32 1.0, %v890_v63 }
 0x1ac   : > { %v894_v3 = vpop.eup %893  ;;  %656 = vst.msk [vmem:[%s1087_s16 + $0x20] sm:$0xff] %vm651_vm1, %v892_v1  ;;  %901 = vrcp.f32 %v618_v0 }
 0x1ad   : > { %665 = vst.msk [vmem:[%s1087_s16 + $0x68] sm:$0xff] %vm651_vm1, %v894_v3  ;;  %903 = vrcp.f32 %v617_v2 }
 0x1af   : > { %v896_v4 = vpop.eup %895 }
 0x1b0   : > { %v898_v5 = vpop.eup %897  ;;  %664 = vst.msk [vmem:[%s1087_s16 + $0x60] sm:$0xff] %vm651_vm1, %v896_v4 }
 0x1b1   : > { %659 = vst.msk [vmem:[%s1087_s16 + $0x38] sm:$0xff] %vm651_vm1, %v898_v5 }
 0x1b2   : > { %v900_v6 = vpop.eup %899 }
 0x1b3   : > { %658 = vst.msk [vmem:[%s1087_s16 + $0x30] sm:$0xff] %vm651_vm1, %v900_v6 }
 0x1b6   : > { %v902_v7 = vpop.eup %901 }
 0x1b7   : > { %v904_v8 = vpop.eup %903  ;;  %667 = vst.msk [vmem:[%s1087_s16 + $0x78] sm:$0xff] %vm651_vm1, %v902_v7 }
 0x1b8   : > { %666 = vst.msk [vmem:[%s1087_s16 + $0x70] sm:$0xff] %vm651_vm1, %v904_v8 }
 0x1b9 PF: > { %s16_s20 = sadd.s32 1, %s911_s20  }
 0x1ba   : > { %p13_p4 = scmp.ge.s32.totalorder %s16_s20, 4  }
 0x1bc   :  { %15 = sbr.rel (!%p13_p4) target bundleno = 2 (0x2), region = 70 }

</bundles_post_ra>
